<compile_context>
chip_gen: v5e
topology: v5e:2x2
jax: 0.10.0
libtpu: 0.0.40
codegen_flags: <defaults>
</compile_context>

<pallas_src>
import functools

import jax
import jax.numpy as jnp
from jax.experimental import pallas as pl
from jax.experimental.pallas import tpu as pltpu

LOSS_WEIGHT = 1.0
NUM_CORES = 2  # leading "parallel" grid axis; uses both TCs on v7x, neutral elsewhere


def _round_up(a, b):
    return ((a + b - 1) // b) * b


def _lyapunov_kernel(bounds_ref, xf_ref, w_ref, b1_ref, out_ref, acc_ref,
                     *, hdim, d, loss_weight):
    i = pl.program_id(1)

    @pl.when(i == 0)
    def _init():
        acc_ref[...] = jnp.zeros_like(acc_ref)

    # ---------------- bound loss (per-lane squared hinge terms) ----------------
    y = bounds_ref[0:1, :]            # (1, TN)
    up = bounds_ref[1:2, :]           # (1, TN)
    lo = bounds_ref[2:3, :]           # (1, TN)
    lower_sq = jnp.minimum(y - lo, 0.0) ** 2
    upper_sq = jnp.maximum(y - up, 0.0) ** 2

    # ---------------- gradient loss: single merged MXU push --------------------
    # w_ref = block_diag(W1, w2 ⊙ W1) : (2H, 2D);  xf = [x^T ; f^T] : (2D, TN)
    xf = xf_ref[...]                                                     # (2D, TN)
    hg = jnp.dot(w_ref[...], xf, preferred_element_type=jnp.float32)    # (2H, TN)
    h = hg[:hdim, :] + b1_ref[...]      # W1 x + b1                     (H, TN)
    g = hg[hdim:, :]                    # (w2 ⊙ W1) f                   (H, TN)
    t = jnp.tanh(h)
    dot = jnp.sum((1.0 - t * t) * g, axis=0, keepdims=True)             # (1, TN)
    normsq = jnp.sum(xf[:d, :] * xf[:d, :], axis=0, keepdims=True)      # (1, TN)
    grad_sq = (dot + normsq) ** 2                                        # (1, TN)

    # Combined per-lane accumulator; scaled by 1/N in the wrapper.
    acc_ref[...] += loss_weight * (lower_sq + upper_sq) + grad_sq

    @pl.when(i == pl.num_programs(1) - 1)
    def _finalize():
        partial = jnp.sum(acc_ref[...])                   # this core's partial sum
        out_ref[...] = jnp.full((8, 128), partial, jnp.float32)


def lyapunov_loss(y_pred, upper, lower, zeroes, f_data, x, w1, b1, w2,
                  *, loss_weight=LOSS_WEIGHT, tn=1024, num_cores=NUM_CORES):
    """Scalar Lyapunov loss. w1: (H, D), b1: (1, H), w2: (1, H).

    `zeroes` is accepted for API parity with the PyTorch module but unused (it is the
    all-zero tensor by construction).  `tn` is the lane tile over the batch; it is
    clamped to the per-core padded batch and to a conservative VMEM budget
    (double-buffered tiles ~= 2*(8+2D)*tn*4 bytes), so it can be raised freely.
    """
    del zeroes
    n, d = x.shape
    hdim = w1.shape[0]

    # ----- tile-size selection: big lanes, clamp to per-core batch & VMEM budget ---
    per_core = -(-n // num_cores)                              # cdiv
    tn_eff = max(128, min(tn, _round_up(per_core, 128)))
    bytes_per_lane = (8 + 2 * d) * 4
    vmem_budget = 8 * 1024 * 1024                              # per-stream-group cap
    max_tn = max(128, (vmem_budget // (2 * bytes_per_lane)) // 128 * 128)
    tn_eff = min(tn_eff, max_tn)
    steps = -(-per_core // tn_eff)                             # grid steps per core
    n_pad = num_cores * steps * tn_eff
    pad = n_pad - n

    # ----- wrapper glue (lane-dense, zero padding contributes exactly 0) -----------
    xf = jnp.concatenate([x, f_data], axis=1).astype(jnp.float32).T      # (2D, N)
    xf = jnp.pad(xf, ((0, 0), (0, pad)))
    bounds = jnp.stack([y_pred[:, 0], upper[:, 0], lower[:, 0]],
                       axis=0).astype(jnp.float32)                       # (3, N)
    bounds = jnp.pad(bounds, ((0, 5), (0, pad)))                         # (8, Npad)

    w1f = w1.astype(jnp.float32)                                         # (H, D)
    w2w1 = w2.astype(jnp.float32)[0, :, None] * w1f                      # (H, D)
    zer = jnp.zeros_like(w1f)
    w_stack = jnp.concatenate(
        [jnp.concatenate([w1f, zer], axis=1),
         jnp.concatenate([zer, w2w1], axis=1)], axis=0)                  # (2H, 2D)
    b1T = jnp.transpose(b1).astype(jnp.float32)                          # (H, 1)

    kernel = functools.partial(_lyapunov_kernel, hdim=hdim, d=d,
                               loss_weight=float(loss_weight))

    out = pl.pallas_call(
        kernel,
        out_shape=jax.ShapeDtypeStruct((num_cores * 8, 128), jnp.float32),
        grid=(num_cores, steps),
        in_specs=[
            pl.BlockSpec((8, tn_eff), lambda c, i: (0, c * steps + i)),      # bounds
            pl.BlockSpec((2 * d, tn_eff), lambda c, i: (0, c * steps + i)),  # [x;f]^T
            pl.BlockSpec((2 * hdim, 2 * d), lambda c, i: (0, 0)),            # W stack
            pl.BlockSpec((hdim, 1), lambda c, i: (0, 0)),                    # b1^T
        ],
        out_specs=pl.BlockSpec((8, 128), lambda c, i: (c, 0)),               # per-core
        scratch_shapes=[pltpu.VMEM((1, tn_eff), jnp.float32)],
        compiler_params=pltpu.CompilerParams(
            dimension_semantics=("parallel", "arbitrary")),
    )(bounds, xf, w_stack, b1T)

    partials = out[0::8, 0]                      # one partial per core
    return jnp.sum(partials) * (1.0 / float(n))


# ---------------- pure-JAX reference (uses jacfwd, mirrors the PyTorch module) -----
def _reference(y_pred, upper, lower, zeroes, f_data, x, w1, b1, w2,
               loss_weight=LOSS_WEIGHT):
    def V(xi):  # xi: (D,) -> (1,)
        h = jnp.tanh(w1 @ xi + b1[0])
        return jnp.array([jnp.dot(w2[0], h)])

    lower_loss = jnp.mean(jnp.minimum(y_pred - lower, zeroes) ** 2)
    upper_loss = jnp.mean(jnp.maximum(y_pred - upper, zeroes) ** 2)
    bound = lower_loss + upper_loss

    dV_dx = jnp.squeeze(jax.vmap(jax.jacfwd(V))(x))           # (N, D)
    dot = jnp.einsum('ij,ij->i', dV_dx, f_data)
    normsq = jnp.linalg.norm(x, axis=1) ** 2
    grad_loss = jnp.mean((dot + normsq) ** 2)
    return loss_weight * bound + grad_loss


if __name__ == "__main__":
    # Small shapes: N not a multiple of the lane tile, to exercise padding, the
    # multi-step accumulator axis, and the two-core partial-output path.
    N, D, H = 300, 8, 32
    key = jax.random.PRNGKey(0)
    ks = jax.random.split(key, 8)

    y_pred = jax.random.normal(ks[0], (N, 1), jnp.float32)
    upper = jnp.abs(jax.random.normal(ks[1], (N, 1), jnp.float32)) + 0.5
    lower = -jnp.abs(jax.random.normal(ks[2], (N, 1), jnp.float32)) - 0.5
    zeroes = jnp.zeros((N, 1), jnp.float32)
    f_data = jax.random.normal(ks[3], (N, D), jnp.float32)
    x = jax.random.normal(ks[4], (N, D), jnp.float32)

    # deterministic parameters for V (1-hidden-layer MLP, scalar output)
    w1 = 0.3 * jax.random.normal(ks[5], (H, D), jnp.float32)
    b1 = 0.1 * jax.random.normal(ks[6], (1, H), jnp.float32)
    w2 = 0.3 * jax.random.normal(ks[7], (1, H), jnp.float32)

    ref = _reference(y_pred, upper, lower, zeroes, f_data, x, w1, b1, w2)

    # Small tile -> grid (2, 2): exercises padding + multi-step accumulation.
    loss_small = lyapunov_loss(y_pred, upper, lower, zeroes, f_data, x,
                               w1, b1, w2, tn=128)
    jax.block_until_ready(loss_small)
    assert jnp.allclose(loss_small, ref, rtol=2e-4, atol=1e-4), (loss_small, ref)

    # Default tile -> single grid step per core (the fast path for this N).
    loss_big = lyapunov_loss(y_pred, upper, lower, zeroes, f_data, x, w1, b1, w2)
    jax.block_until_ready(loss_big)
    assert jnp.allclose(loss_big, ref, rtol=2e-4, atol=1e-4), (loss_big, ref)

    print("KERNEL_OK")
</pallas_src>

<mosaic_0001>
module attributes {stable_mosaic.version = 11 : i64} {
  func.func @_lyapunov_kernel(%arg0: i32, %arg1: i32, %arg2: memref<8x128xf32, #tpu.memory_space<vmem>>, %arg3: memref<16x128xf32, #tpu.memory_space<vmem>>, %arg4: memref<64x16xf32, #tpu.memory_space<vmem>>, %arg5: memref<32x1xf32, #tpu.memory_space<vmem>>, %arg6: memref<8x128xf32, #tpu.memory_space<vmem>>, %arg7: memref<1x128xf32, #tpu.memory_space<vmem>>) attributes {dimension_semantics = [#tpu.dimension_semantics<parallel>, #tpu.dimension_semantics<arbitrary>], iteration_bounds = array<i64: 2, 2>, scalar_prefetch = 0 : i64, scratch_operands = 1 : i64, tpu.core_type = #tpu.core_type<tc>, window_params = [{transform_indices = @transform_0, window_bounds = array<i64: 8, 128>}, {transform_indices = @transform_1, window_bounds = array<i64: 16, 128>}, {pipeline_mode = #tpu.pipeline_mode<synchronous>, transform_indices = @transform_2, window_bounds = array<i64: 64, 16>}, {pipeline_mode = #tpu.pipeline_mode<synchronous>, transform_indices = @transform_3, window_bounds = array<i64: 32, 1>}, {transform_indices = @transform_4, window_bounds = array<i64: 8, 128>}]} {
    %c0_i32 = arith.constant 0 : i32
    %0 = arith.cmpi eq, %arg1, %c0_i32 : i32
    %1 = arith.extui %0 : i1 to i32
    %c0_i32_0 = arith.constant 0 : i32
    %2 = arith.cmpi ne, %1, %c0_i32_0 : i32
    scf.if %2 {
      %cst_21 = arith.constant 0.000000e+00 : f32
      %46 = vector.broadcast %cst_21 : f32 to vector<1x128xf32>
      %c0_22 = arith.constant 0 : index
      %c0_23 = arith.constant 0 : index
      %47 = vector.load %arg7[%c0_22, %c0_23] : memref<1x128xf32, #tpu.memory_space<vmem>>, vector<1x128xf32>
      tpu.vector_store %arg7[%c0_22, %c0_23], %46 {strides = array<i32>} : memref<1x128xf32, #tpu.memory_space<vmem>>, vector<1x128xf32>,
    } else {
    }
    %c0 = arith.constant 0 : index
    %c0_1 = arith.constant 0 : index
    %3 = vector.load %arg2[%c0, %c0_1] : memref<8x128xf32, #tpu.memory_space<vmem>>, vector<1x128xf32>
    %c1 = arith.constant 1 : index
    %c0_2 = arith.constant 0 : index
    %4 = vector.load %arg2[%c1, %c0_2] : memref<8x128xf32, #tpu.memory_space<vmem>>, vector<1x128xf32>
    %c2 = arith.constant 2 : index
    %c0_3 = arith.constant 0 : index
    %5 = vector.load %arg2[%c2, %c0_3] : memref<8x128xf32, #tpu.memory_space<vmem>>, vector<1x128xf32>
    %6 = arith.subf %3, %5 : vector<1x128xf32>
    %cst = arith.constant 0.000000e+00 : f32
    %7 = vector.broadcast %cst : f32 to vector<1x128xf32>
    %8 = arith.minimumf %6, %7 : vector<1x128xf32>
    %9 = arith.mulf %8, %8 : vector<1x128xf32>
    %10 = arith.subf %3, %4 : vector<1x128xf32>
    %cst_4 = arith.constant 0.000000e+00 : f32
    %11 = vector.broadcast %cst_4 : f32 to vector<1x128xf32>
    %12 = arith.maximumf %10, %11 : vector<1x128xf32>
    %13 = arith.mulf %12, %12 : vector<1x128xf32>
    %c0_5 = arith.constant 0 : index
    %c0_6 = arith.constant 0 : index
    %14 = vector.load %arg3[%c0_5, %c0_6] : memref<16x128xf32, #tpu.memory_space<vmem>>, vector<16x128xf32>
    %c0_7 = arith.constant 0 : index
    %c0_8 = arith.constant 0 : index
    %15 = vector.load %arg4[%c0_7, %c0_8] : memref<64x16xf32, #tpu.memory_space<vmem>>, vector<64x16xf32>
    %cst_9 = arith.constant dense<0.000000e+00> : vector<64x128xf32>
    %16 = tpu.matmul %15, %14, %cst_9 {dimension_numbers = #tpu.dot_dimension_numbers<[1], [0], [0], [1], [0, 0, 1, 1], [], []>} : vector<64x16xf32>, vector<16x128xf32>, vector<64x128xf32> -> vector<64x128xf32>
    %17 = vector.extract_strided_slice %16 {offsets = [0, 0], sizes = [32, 128], strides = [1, 1]} : vector<64x128xf32> to vector<32x128xf32>
    %c0_10 = arith.constant 0 : index
    %c0_11 = arith.constant 0 : index
    %18 = vector.load %arg5[%c0_10, %c0_11] : memref<32x1xf32, #tpu.memory_space<vmem>>, vector<32x1xf32>
    %19 = vector.broadcast %18 : vector<32x1xf32> to vector<32x128xf32>
    %20 = arith.addf %17, %19 : vector<32x128xf32>
    %21 = vector.extract_strided_slice %16 {offsets = [32, 0], sizes = [32, 128], strides = [1, 1]} : vector<64x128xf32> to vector<32x128xf32>
    %22 = math.tanh %20 : vector<32x128xf32>
    %23 = arith.mulf %22, %22 : vector<32x128xf32>
    %cst_12 = arith.constant 1.000000e+00 : f32
    %24 = vector.broadcast %cst_12 : f32 to vector<32x128xf32>
    %25 = arith.subf %24, %23 : vector<32x128xf32>
    %26 = arith.mulf %25, %21 : vector<32x128xf32>
    %cst_13 = arith.constant dense<0.000000e+00> : vector<128xf32>
    %27 = vector.multi_reduction <add>, %26, %cst_13 [0] : vector<32x128xf32> to vector<128xf32>
    %28 = vector.shape_cast %27 : vector<128xf32> to vector<1x128xf32>
    %29 = vector.extract_strided_slice %14 {offsets = [0, 0], sizes = [8, 128], strides = [1, 1]} : vector<16x128xf32> to vector<8x128xf32>
    %30 = vector.extract_strided_slice %14 {offsets = [0, 0], sizes = [8, 128], strides = [1, 1]} : vector<16x128xf32> to vector<8x128xf32>
    %31 = arith.mulf %29, %30 : vector<8x128xf32>
    %cst_14 = arith.constant dense<0.000000e+00> : vector<128xf32>
    %32 = vector.multi_reduction <add>, %31, %cst_14 [0] : vector<8x128xf32> to vector<128xf32>
    %33 = vector.shape_cast %32 : vector<128xf32> to vector<1x128xf32>
    %34 = arith.addf %28, %33 : vector<1x128xf32>
    %35 = arith.mulf %34, %34 : vector<1x128xf32>
    %c0_15 = arith.constant 0 : index
    %c0_16 = arith.constant 0 : index
    %36 = vector.load %arg7[%c0_15, %c0_16] : memref<1x128xf32, #tpu.memory_space<vmem>>, vector<1x128xf32>
    %37 = arith.addf %9, %13 : vector<1x128xf32>
    %cst_17 = arith.constant 1.000000e+00 : f32
    %38 = vector.broadcast %cst_17 : f32 to vector<1x128xf32>
    %39 = arith.mulf %38, %37 : vector<1x128xf32>
    %40 = arith.addf %39, %35 : vector<1x128xf32>
    %41 = arith.addf %36, %40 : vector<1x128xf32>
    %c0_18 = arith.constant 0 : index
    %c0_19 = arith.constant 0 : index
    %42 = vector.load %arg7[%c0_18, %c0_19] : memref<1x128xf32, #tpu.memory_space<vmem>>, vector<1x128xf32>
    tpu.vector_store %arg7[%c0_18, %c0_19], %41 {strides = array<i32>} : memref<1x128xf32, #tpu.memory_space<vmem>>, vector<1x128xf32>,
    %c1_i32 = arith.constant 1 : i32
    %43 = arith.cmpi eq, %arg1, %c1_i32 : i32
    %44 = arith.extui %43 : i1 to i32
    %c0_i32_20 = arith.constant 0 : i32
    %45 = arith.cmpi ne, %44, %c0_i32_20 : i32
    scf.if %45 {
      %c0_21 = arith.constant 0 : index
      %c0_22 = arith.constant 0 : index
      %46 = vector.load %arg7[%c0_21, %c0_22] : memref<1x128xf32, #tpu.memory_space<vmem>>, vector<1x128xf32>
      %47 = vector.shape_cast %46 : vector<1x128xf32> to vector<1x1x128xf32>
      %cst_23 = arith.constant dense<0.000000e+00> : vector<1xf32>
      %48 = vector.multi_reduction <add>, %47, %cst_23 [1, 2] : vector<1x1x128xf32> to vector<1xf32>
      %49 = vector.shape_cast %48 : vector<1xf32> to vector<1x1x1xf32>
      %50 = vector.extract %49[0, 0, 0] : f32 from vector<1x1x1xf32>
      %51 = vector.broadcast %50 : f32 to vector<8x128xf32>
      %c0_24 = arith.constant 0 : index
      %c0_25 = arith.constant 0 : index
      %52 = vector.load %arg6[%c0_24, %c0_25] : memref<8x128xf32, #tpu.memory_space<vmem>>, vector<8x128xf32>
      tpu.vector_store %arg6[%c0_24, %c0_25], %51 {strides = array<i32>} : memref<8x128xf32, #tpu.memory_space<vmem>>, vector<8x128xf32>,
    } else {
    }
    return
  }
  func.func @transform_0(%arg0: i32, %arg1: i32) -> (i32, i32) {
    %c2_i32 = arith.constant 2 : i32
    %0 = arith.muli %arg0, %c2_i32 : i32
    %1 = arith.addi %0, %arg1 : i32
    %c0_i32 = arith.constant 0 : i32
    %c0_i32_0 = arith.constant 0 : i32
    return %c0_i32, %1 : i32, i32
  }
  func.func @transform_1(%arg0: i32, %arg1: i32) -> (i32, i32) {
    %c2_i32 = arith.constant 2 : i32
    %0 = arith.muli %arg0, %c2_i32 : i32
    %1 = arith.addi %0, %arg1 : i32
    %c0_i32 = arith.constant 0 : i32
    %c0_i32_0 = arith.constant 0 : i32
    return %c0_i32, %1 : i32, i32
  }
  func.func @transform_2(%arg0: i32, %arg1: i32) -> (i32, i32) {
    %c0_i32 = arith.constant 0 : i32
    %c0_i32_0 = arith.constant 0 : i32
    %c0_i32_1 = arith.constant 0 : i32
    return %c0_i32, %c0_i32_0 : i32, i32
  }
  func.func @transform_3(%arg0: i32, %arg1: i32) -> (i32, i32) {
    %c0_i32 = arith.constant 0 : i32
    %c0_i32_0 = arith.constant 0 : i32
    %c0_i32_1 = arith.constant 0 : i32
    return %c0_i32, %c0_i32_0 : i32, i32
  }
  func.func @transform_4(%arg0: i32, %arg1: i32) -> (i32, i32) {
    %c0_i32 = arith.constant 0 : i32
    %c0_i32_0 = arith.constant 0 : i32
    return %arg0, %c0_i32 : i32, i32
  }
}

</mosaic_0001>

<bundles_post_ra>
// kernel: tpu_custom_call.1
= control target key start
LH: loop header
LB: loop body
LE: loop exit
PB: predicated region body
PF: predicated region fallthrough
CT: control target
= control target key end

     0   :  { %s1065_s0 = inlined_call_operand.vmem [shape: f32[8,512], index: 0, kind: input, shape index: {}]   ;;  %s1066_s1 = inlined_call_operand.vmem [shape: f32[16,512], index: 1, kind: input, shape index: {}]   ;;  %s1067_s2 = inlined_call_operand.vmem [shape: f32[64,16], index: 2, kind: input, shape index: {}]   ;;  %s1068_s3 = inlined_call_operand.vmem [shape: f32[32,1], index: 3, kind: input, shape index: {}]   ;;  %s1069_s4 = inlined_call_operand.hbm [shape: f32[16,128], index: 4, kind: output, shape index: {}]  }
   0x1   :  { %1071 = sst [smem:[#allocation8_spill]] %s1066_s1 }
   0x2   :  { %9 = vsyncpa [#allocation5], 0 }
   0x3   :  { %11 = vsyncpa [#allocation5 + $0x1], 0  ;;  %s843_s15 = smov 0   ;;  %s845_s16 = smov 0  }
   0x4   :  { %s847_s17 = smov 0   ;;  %s849_s18 = smov 0  }
   0x5   :  { %s851_s19 = smov 0   ;;  %s853_s20 = smov 0  }
   0x6   :  { %s855_s21 = smov 0   ;;  %s857_s22 = smov 0  }
   0x7   :  { %s859_s23 = smov 0   ;;  %s861_s24 = smov 0  }
   0x8 LB: > { %s567_s25 = sadd.s32 4294967295, %s814_s24   ;;  %s568_s26 = sadd.s32 4294967294, %s814_s24   ;;  %s814_s24 = sphi %s861_s24, %s17_s24   ;;  %s810_s23 = sphi %s859_s23, %s1086_s23   ;;  %s806_s22 = sphi %s857_s22, %s1085_s22   ;;  %s802_s21 = sphi %s855_s21, %s1084_s21   ;;  %s798_s20 = sphi %s853_s20, %s1083_s20   ;;  %s794_s19 = sphi %s851_s19, %s1082_s19   ;;  %s790_s18 = sphi %s849_s18, %s1081_s18   ;;  %s786_s17 = sphi %s847_s17, %s1080_s17   ;;  %s782_s16 = sphi %s845_s16, %s1079_s16   ;;  %s778_s15 = sphi %s843_s15, %s1078_s15  }
   0x9   : > { %s26_s27 = sadd.s32 1, %s806_s22  ;;  %s29_s28 = sadd.s32 1, %s810_s23 }
   0xa   : > { %p27_p0 = scmp.ge.s32.totalorder %s26_s27, 2  ;;  %s571_s29 = sshll.u32 %s810_s23, 1 }
   0xb   : > { %s899_s30 = sadd.s32 %s806_s22, %s571_s29  ;;  %s70_s5 = sadd.s32 1, %s794_s19 }
   0xc   : > { %s1088_s27 = smov (%p27_p0, %s26_s27), 0  ;;  %s1090_s28 = smov (!%p27_p0, %s29_s28), %s810_s23 }
   0xd   : > { %p77_p1 = scmp.ne.s32.totalorder %s794_s19, %s790_s18  ;;  %p78_p2 = scmp.eq.s32.totalorder %s814_s24, 0 }
   0xe   : > { %p31_p3 = scmp.ge.s32.totalorder %s1090_s28, 2  ;;  %s138_s6 = sadd.s32 1, %s786_s17 }
   0xf   : > { %p909_p4 = por %p78_p2, %p77_p1  ;;  %p148_p5 = scmp.ne.s32.totalorder %s786_s17, %s782_s16 }
  0x10   : > { %s1092_s28 = smov (%p31_p3, %s1090_s28), 0  ;;  %p149_p6 = scmp.eq.s32.totalorder %s567_s25, 3 }
  0x11   : > { %1073 = sst [smem:[#allocation7_spill]] %s1092_s28  ;;  %p154_p7 = scmp.ne.s32.totalorder %s782_s16, %s778_s15 }
  0x12   : > { %s572_s8 = sshll.u32 %s1092_s28, 1  ;;  %s135_s9 = ssub.s32 %s810_s23, %s1092_s28 }
  0x13   : > { %s66_s10 = sadd.s32 %s572_s8, %s1088_s27  ;;  %p136_p8 = scmp.eq.s32.totalorder %s135_s9, 0 }
  0x14   : > { %s67_s11 = ssub.s32 %s899_s30, %s66_s10  ;;  %p924_p9 = por %p149_p6, %p148_p5 }
  0x15   : > { %p68_p10 = scmp.eq.s32.totalorder %s67_s11, 0  ;;  %p155_p11 = scmp.eq.s32.totalorder %s568_s26, 3 }
  0x16   : > { %s929_s13 = scalar_select %p136_p8, %s786_s17, %s138_s6  }
  0x17   : > { %s932_s14 = scalar_select %p68_p10, %s794_s19, %s70_s5  }
  0x18   : > { %p934_p12 = por %p155_p11, %p154_p7  ;;  %p574_p13 = scmp.ge.s32.totalorder %s814_s24, 4 }
  0x1a   : > { %177 = sbr.rel (%p574_p13) target bundleno = 43 (0x2b), region = 24 }
  0x1f   : > { %191 = sbr.rel (!%p909_p4) target bundleno = 43 (0x2b), region = 32  ;;  %s193_s25 = sand.u32 (%p909_p4), 1, %s794_s19  }
  0x20   : > { %s577_s8 = sshll.u32 (%p909_p4), %s899_s30, 3  ;;  %s575_s9 = sshll.u32 (%p909_p4), %s193_s25, 4 }
  0x21   : > { %s1076_s1 = sld [smem:[#allocation8_spill]] (%p909_p4)  ;;  %s195_s10 = scalar_lea.vmem (%p909_p4), [#allocation3], %s575_s9 }
  0x27   : > { %s199_s5 = scalar_lea.vmem %s1076_s1, %s577_s8 }
  0x28   : > { %v230_v0 = vld [vmem:[%s199_s5] sm:$0xff] }
  0x29   : > { %v232_v1 = vld [vmem:[%s199_s5 + $0x20] sm:$0xff]  ;;  %231 = vst [vmem:[%s195_s10] sm:$0xff] %v230_v0 }
  0x2a   : > { %233 = vst [vmem:[%s195_s10 + $0x8] sm:$0xff] %v232_v1 }
  0x2b PF: > { %p578_p0 = scmp.ge.s32.totalorder %s814_s24, 1  ;;  %p238_p1 = scmp.lt.s32.totalorder %s814_s24, 5 }
  0x2d   : > { %p239_p2 = pnand %p578_p0, %p238_p1 }
  0x2e   : > { %s245_s30 = sand.u32 (!%p239_p2), 1, %s790_s18   ;;  %s273_s7 = sand.u32 (!%p239_p2), 1, %s782_s16  }
  0x2f   : > { %242 = sbr.rel (%p239_p2) target bundleno = 443 (0x1bb), region = 70  ;;  %s579_s11 = sshll.u32 (!%p239_p2), %s245_s30, 4 }
  0x30   : > { %s952_s25 = sshll.u32 (!%p239_p2), %s273_s7, 3  ;;  %s581_s8 = sshll.u32 (!%p239_p2), %s802_s21, 1 }
  0x31   : > { %s277_s9 = sadd.s32 (!%p239_p2), %s798_s20, %s581_s8  ;;  %s247_s1 = scalar_lea.vmem (!%p239_p2), [#allocation3], %s579_s11 }
  0x32   : > { %p278_p3 = scmp.lt.s32.totalorder (!%p239_p2), %s277_s9, 3  ;;  %s275_s28 = scalar_lea.vmem (!%p239_p2), [#allocation4], %s952_s25 }
  0x33   : > { %p583_p4 = scmp.ne.s32.totalorder (!%p239_p2), %s798_s20, 0 }
  0x34   : > { %s1094_s9 = smov (!%p278_p3, %s277_s9), 3 }
  0x35   : > { %s582_s26 = sshll.u32 %s1094_s9, 3  ;;  %289 = sbr.rel (%p583_p4) target bundleno = 60 (0x3c), region = 78 }
  0x36   : > { %s959_s10 = scalar_lea.vmem %s1065_s0, %s582_s26 }
  0x3a   : > { %v816_v2 = vmov 0.0  }
  0x3b   : > { %290 = vst [vmem:[#allocation2] sm:$0x1] %v816_v2 }
  0x3c PF: > { %v301_v3 = vld [vmem:[%s247_s1 + $0x8] sm:$0xff]  ;;  %v300_v4 = vld [vmem:[%s247_s1] sm:$0xff]  ;;  %vm310_vm0 = vcmask 130048   ;;  %v817_v7 = vmov 0   ;;  %p592_p5 = scmp.ne.s32.totalorder %s798_s20, 1 }
  0x3d   : > { %349 = vmatpush.msra.mxu0 %v301_v3  ;;  %597 = vmatpush.msra.mxu1 %v301_v3  ;;  %v302_v5 = vld [vmem:[%s1067_s2] sm:$0xff]  ;;  %v304_v6 = vld [vmem:[%s1067_s2 + $0x10] sm:$0xff]  ;;  %v303_v12 = vld [vmem:[%s1067_s2 + $0x8] sm:$0xff]  ;;  %v429_v34 = vmul.f32 %v300_v4, %v300_v4 }
  0x3e   : > { %694 = vset.pattern.permute.xlu0 %v817_v7  ;;  %v376_v8 = vld [vmem:[%s1068_s3] sm:$0xff]  ;;  %598 = vmatpush.msra.mxu2 %v301_v3  ;;  %v378_v9 = vld [vmem:[%s1068_s3 + $0x10] sm:$0xff]  ;;  %v305_v13 = vld [vmem:[%s1067_s2 + $0x18] sm:$0xff] }
  0x3f   : > { %350 = vmatpush.msra.mxu0 %v300_v4  ;;  %600 = vmatpush.msra.mxu1 %v300_v4  ;;  %v306_v10 = vld [vmem:[%s1067_s2 + $0x20] sm:$0xff]  ;;  %v308_v11 = vld [vmem:[%s1067_s2 + $0x30] sm:$0xff]  ;;  %v377_v14 = vld [vmem:[%s1068_s3 + $0x8] sm:$0xff]  ;;  %v430_v39 = vrot.slane %v429_v34, 4 }
  0x40   : > { %584 = vmatmul.msk.f32.vlgmr.msra.gmra.mxu0 %vm310_vm0, %v302_v5  ;;  %586 = vmatmul.msk.f32.vlgmr.msra.gmra.mxu1 %vm310_vm0, %v304_v6  ;;  %v379_v15 = vld [vmem:[%s1068_s3 + $0x18] sm:$0xff]  ;;  %v307_v16 = vld [vmem:[%s1067_s2 + $0x28] sm:$0xff]  ;;  %v291_v56 = vld [vmem:[%s959_s10] sm:$0x1] }
  0x41   : > { %382 = vperm.xlu0 %694, %v376_v8   ;;  %599 = vmatpush.msra.mxu3 %v301_v3  ;;  %v309_v17 = vld [vmem:[%s1067_s2 + $0x38] sm:$0xff]  ;;  %v431_v46 = vadd.f32 %v430_v39, %v429_v34  ;;  %v292_v57 = vld [vmem:[%s959_s10 + $0x1] sm:$0x1]  ;;  %v293_v58 = vld [vmem:[%s959_s10 + $0x2] sm:$0x1] }
  0x42   : > { %695 = vset.pattern.permute.xlu1 %v817_v7  ;;  %601 = vmatpush.msra.mxu2 %v300_v4  ;;  %v294_v60 = vsub.f32 %v291_v56, %v293_v58  ;;  %v297_v61 = vsub.f32 %v291_v56, %v292_v57 }
  0x43   : > { %602 = vmatpush.msra.mxu3 %v300_v4  ;;  %392 = vperm.xlu1 %695, %v378_v9   ;;  %v432_v53 = vrot.slane %v431_v46, 2 }
  0x44   : > { %588 = vmatmul.msk.f32.vlgmr.msra.gmra.mxu2 %vm310_vm0, %v306_v10  ;;  %590 = vmatmul.msk.f32.vlgmr.msra.gmra.mxu3 %vm310_vm0, %v308_v11  ;;  %v295_v1 = vmin.f32 %v294_v60, 0.0  ;;  %v298_v2 = vmax.f32 %v297_v61, 0.0 }
  0x45   : > { %v433_v63 = vadd.f32 %v432_v53, %v431_v46 }
  0x46   : > { %v296_v6 = vmul.f32 %v295_v1, %v295_v1  ;;  %v299_v7 = vmul.f32 %v298_v2, %v298_v2 }
  0x47   : > { %v434_v4 = vrot.slane %v433_v63, 1 }
  0x48   : > { %585 = vmatmul.msk.f32.gmra.mxu0 %vm310_vm0, %v303_v12  ;;  %587 = vmatmul.msk.f32.gmra.mxu1 %vm310_vm0, %v305_v13  ;;  %v439_v12 = vadd.f32 %v299_v7, %v296_v6 }
  0x49   : > { %387 = vperm.xlu0 %694, %v377_v14   ;;  %v435_v9 = vadd.f32 %v434_v4, %v433_v63  ;;  %v438_v14 = vld [vmem:[#allocation2] sm:$0x1] }
  0x4b   : > { %397 = vperm.xlu1 %695, %v379_v15  }
  0x4c   : > { %589 = vmatmul.msk.f32.gmra.mxu2 %vm310_vm0, %v307_v16  ;;  %591 = vmatmul.msk.f32.gmra.mxu3 %vm310_vm0, %v309_v17 }
  0xb3   : > { %v383_v18 = vpop.permute.xlu0 %382 }
  0xb5   : > { %v393_v19 = vpop.permute.xlu1 %392 }
  0xbb   : > { %v388_v24 = vpop.permute.xlu0 %387 }
  0xbd   : > { %v352_v20 = vpop.f32.mrf.mxu0  ;;  %v358_v21 = vpop.f32.mrf.mxu1 }
  0xbe   : > { %v400_v22 = vadd.f32 %v383_v18, %v352_v20  ;;  %v402_v23 = vadd.f32 %v393_v19, %v358_v21  ;;  %v398_v25 = vpop.permute.xlu1 %397 }
  0xc0   : > { %696 = vtanh.f32 %v400_v22 }
  0xc1   : > { %698 = vtanh.f32 %v402_v23 }
  0xc5   : > { %v355_v26 = vpop.f32.mrf.mxu0  ;;  %v361_v27 = vpop.f32.mrf.mxu1 }
  0xc6   : > { %v401_v28 = vadd.f32 %v388_v24, %v355_v26  ;;  %v403_v29 = vadd.f32 %v398_v25, %v361_v27  ;;  %v697_v31 = vpop.eup %696 }
  0xc7   : > { %v364_v30 = vpop.f32.mrf.mxu2  ;;  %v699_v32 = vpop.eup %698  ;;  %v408_v35 = vmul.f32 %v697_v31, %v697_v31 }
  0xc8   : > { %700 = vtanh.f32 %v401_v28  ;;  %v370_v33 = vpop.f32.mrf.mxu3  ;;  %v410_v36 = vmul.f32 %v699_v32, %v699_v32 }
  0xc9   : > { %702 = vtanh.f32 %v403_v29  ;;  %v412_v41 = vsub.f32 1.0, %v408_v35 }
  0xca   : > { %v414_v44 = vsub.f32 1.0, %v410_v36 }
  0xcb   : > { %v416_v47 = vmul.f32 %v412_v41, %v364_v30 }
  0xcc   : > { %v418_v51 = vmul.f32 %v414_v44, %v370_v33 }
  0xce   : > { %v701_v37 = vpop.eup %700 }
  0xcf   : > { %v703_v38 = vpop.eup %702  ;;  %v409_v40 = vmul.f32 %v701_v37, %v701_v37  ;;  %v367_v43 = vpop.f32.mrf.mxu2 }
  0xd0   : > { %v411_v42 = vmul.f32 %v703_v38, %v703_v38  ;;  %v373_v50 = vpop.f32.mrf.mxu3 }
  0xd1   : > { %v413_v45 = vsub.f32 1.0, %v409_v40 }
  0xd2   : > { %v415_v49 = vsub.f32 1.0, %v411_v42 }
  0xd3   : > { %v417_v48 = vmul.f32 %v413_v45, %v367_v43 }
  0xd4   : > { %v419_v54 = vmul.f32 %v415_v49, %v373_v50 }
  0xd5   : > { %v420_v52 = vadd.f32 %v417_v48, %v416_v47 }
  0xd7   : > { %v421_v55 = vadd.f32 %v420_v52, %v418_v51 }
  0xd9   : > { %v422_v59 = vadd.f32 %v421_v55, %v419_v54 }
  0xdb   : > { %v423_v62 = vrot.slane %v422_v59, 4 }
  0xdd   : > { %v424_v0 = vadd.f32 %v423_v62, %v422_v59 }
  0xdf   : > { %v425_v3 = vrot.slane %v424_v0, 2 }
  0xe1   : > { %v426_v5 = vadd.f32 %v425_v3, %v424_v0 }
  0xe3   : > { %v427_v8 = vrot.slane %v426_v5, 1 }
  0xe5   : > { %v428_v10 = vadd.f32 %v427_v8, %v426_v5 }
  0xe7   : > { %v436_v11 = vadd.f32 %v435_v9, %v428_v10 }
  0xe9   : > { %v437_v13 = vmul.f32 %v436_v11, %v436_v11 }
  0xeb   : > { %v440_v15 = vadd.f32 %v439_v12, %v437_v13  ;;  %446 = sbr.rel (%p592_p5) target bundleno = 428 (0x1ac), region = 82 }
  0xed   : > { %v441_v16 = vadd.f32 %v440_v15, %v438_v14 }
  0xef   : > { %442 = vst [vmem:[#allocation2] sm:$0x1] %v441_v16 }
  0xf0   : > { %vm448_vm1 = vcmask 1040384  }
  0xf6   : > { %v447_v17 = vld [vmem:[#allocation2] sm:$0x1] }
  0xf7   : > { %v449_v18 = vsel %vm448_vm1, %v447_v17, 0.0 }
  0xf8   : > { %450 = vadd.xlane.f32.xlu0 %v449_v18 }
 0x16b   : > { %v451_v19 = vpop.xlane.xlu0 %450 }
 0x16c   : > { %v452_v20 = vrot.slane %v451_v19, 4 }
 0x16e   : > { %v453_v21 = vadd.f32 %v452_v20, %v451_v19 }
 0x170   : > { %v454_v22 = vrot.slane %v453_v21, 2 }
 0x172   : > { %v455_v23 = vadd.f32 %v454_v22, %v453_v21 }
 0x174   : > { %v456_v24 = vrot.slane %v455_v23, 1 }
 0x176   : > { %v457_v25 = vadd.f32 %v456_v24, %v455_v23 }
 0x178   : > { %603 = vpush %v457_v25 }
 0x1a9   : > { %s604_s10 = spop %603 }
 0x1aa   : > { %v459_v26 = vstv %s604_s10 }
 0x1ab   : > { %460 = vst [vmem:[%s275_s28] sm:$0xff] %v459_v26 }
 0x1ac PF: > { %s594_s20 = sshll.u32 %s802_s21, 3  ;;  %s474_s18 = sshll.u32 %s275_s28, 4  ;;  %s475_s18 = int_to_ptr.vmem [resolvable:$true] %s474_s18 }
 0x1ad   : > { %s472_s5 = scalar_lea.hbm %s1069_s4, %s594_s20  ;;  %s462_s8 = scalar_lea.sflag [#allocation5], %s273_s7 }
 0x1ae   : > { %s476_s30 = sshll.u32 %s472_s5, 4  ;;  %s724_s10 = scalar_lea.hbm %s1069_s4, 16  ;;  %s477_s30 = int_to_ptr.hbm [resolvable:$true] %s476_s30 }
 0x1af   : > { %s718_s9 = sshra.s32 %s477_s30, 4  ;;  %s719_s9 = int_to_ptr.hbm [resolvable:$true] %s718_s9 }
 0x1b0   : > { %s720_s11 = scalar_lea.hbm %s719_s9, 8  ;;  %p725_p10 = scmp.lt.s32.totalorder %s719_s9, %s1069_s4 }
 0x1b1   : > { %p721_p6 = scmp.ne.s32.totalorder %s719_s9, %s720_s11  ;;  %p726_p11 = scmp.lt.s32.totalorder %s724_s10, %s720_s11 }
 0x1b3   : > { %p722_p7 = pnand %p721_p6, %p924_p9  ;;  %p727_p13 = por %p726_p11, %p725_p10 }
 0x1b5   : > { %p723_p8 = pneg %p722_p7 }
 0x1b7   : > { %p728_p0 = pnand %p727_p13, %p723_p8 }
 0x1b9   : > { %731 = shalt.err (!%p728_p0)
}
 0x1ba   : > { %605 = dma.vmem_to_hbm [thread:$0]  (%p924_p9), %s475_s18, 128, %s477_s30, %s462_s8  }
 0x1bb PF: > { %p611_p1 = scmp.ge.s32.totalorder %s814_s24, 2  ;;  %s488_s28 = sand.u32 1, %s778_s15  }
 0x1bc   : > { %s489_s7 = scalar_lea.sflag [#allocation5], %s488_s28 }
 0x1bd   : > { %p608_p2 = pnand %p611_p1, %p934_p12 }
 0x1bf   : > { %p609_p3 = pneg %p608_p2 }
 0x1c1   : > { %773 = dma.done.wait (%p609_p3), %s489_s7, 128  }
 0x1c2   : > { %775 = vsyncadd (%p609_p3), %s489_s7, 4294967168  ;;  %s17_s24 = sadd.s32 1, %s814_s24   ;;  %s1077_s12 = sld [smem:[#allocation7_spill]] }
 0x1c3   : > { %p14_p4 = scmp.ge.s32.totalorder %s17_s24, 6   ;;  %s1078_s15 = smov %s782_s16 }
 0x1c4   : > { %s1079_s16 = smov %s786_s17  ;;  %s1080_s17 = smov %s929_s13 }
 0x1c5   : > { %s1081_s18 = smov %s794_s19  ;;  %s1082_s19 = smov %s932_s14 }
 0x1c6   : > { %s1083_s20 = smov %s806_s22  ;;  %s1084_s21 = smov %s810_s23 }
 0x1c7   : > { %s1085_s22 = smov %s1088_s27  ;;  %16 = sbr.rel (!%p14_p4) target bundleno = 8 (0x8), region = 125 }
 0x1c8   : > { %s1086_s23 = smov %s1077_s12 }
 0x1cc   :  { %495 = vsyncpa [#allocation5], 1 }
 0x1cd   :  { %497 = vsyncpa [#allocation5 + $0x1], 1 }

</bundles_post_ra>
